<compile_context>
chip_gen: v7x
topology: tpu7x:2x2x1
jax: 0.10.0
libtpu: 0.0.40
codegen_flags: <defaults>
</compile_context>

<pallas_src>
import functools

import jax
import jax.numpy as jnp
from jax import lax
from jax.experimental import pallas as pl
from jax.experimental.pallas import tpu as pltpu


def _round_up(x, n):
    return ((x + n - 1) // n) * n


# Contract the last dim of both operands, i.e. A @ B.T (nn.Linear layout).
_DIMS_T = (((1,), (1,)), ((), ()))


def _mlp_kernel(x_ref, w1_ref, w3_ref, w2_ref, o_ref, acc_ref):
    # x_ref:   (tm, dim)      token tile (native dtype: bf16 / f32)
    # w1_ref:  (tn, dim)      gate-proj rows for this inter chunk (nn.Linear layout)
    # w3_ref:  (tn, dim)      up-proj rows for this inter chunk
    # w2_ref:  (dim, tn)      down-proj columns for this inter chunk
    # o_ref:   (1, tm, dim)   output tile (written on last inter step)
    # acc_ref: (tm, dim) f32  accumulator, resident across the inter axis
    j = pl.program_id(2)

    @pl.when(j == 0)
    def _():
        acc_ref[...] = jnp.zeros_like(acc_ref)

    x = x_ref[...]
    # Native-dtype MXU operands, f32 accumulation; x @ w1.T and x @ w3.T.
    h1 = lax.dot_general(x, w1_ref[...], _DIMS_T,
                         preferred_element_type=jnp.float32)
    h3 = lax.dot_general(x, w3_ref[...], _DIMS_T,
                         preferred_element_type=jnp.float32)

    # SiLU gating in f32 (elementwise over inter, so per-chunk gating followed
    # by accumulating partial w2 products is mathematically exact).
    gated = (h1 * jax.nn.sigmoid(h1) * h3).astype(w2_ref.dtype)

    # gated @ w2_chunk.T, accumulated in f32.
    acc_ref[...] += lax.dot_general(gated, w2_ref[...], _DIMS_T,
                                    preferred_element_type=jnp.float32)

    @pl.when(j == pl.num_programs(2) - 1)
    def _():
        o_ref[...] = acc_ref[...].astype(o_ref.dtype)[None]


@functools.partial(jax.jit, static_argnames=("tm", "tn", "nsplit", "vmem_limit"))
def _mlp_2d(x2d, w1, w2, w3, *, tm, tn, nsplit, vmem_limit):
    m, dim = x2d.shape
    inter = w1.shape[0]

    m_pad = _round_up(m, tm)
    inter_pad = _round_up(inter, tn * nsplit)
    nt_split = (inter_pad // tn) // nsplit
    m_tiles = m_pad // tm

    # Padding only happens when inter / m are not tile-multiples; no transpose,
    # no interleave — weights stay in their nn.Linear (out, in) layout.
    if inter_pad != inter:
        pad = inter_pad - inter
        w1 = jnp.pad(w1, ((0, pad), (0, 0)))
        w3 = jnp.pad(w3, ((0, pad), (0, 0)))
        w2 = jnp.pad(w2, ((0, 0), (0, pad)))
    xp = x2d if m_pad == m else jnp.pad(x2d, ((0, m_pad - m), (0, 0)))

    itemsize = jnp.dtype(x2d.dtype).itemsize
    cost = pl.CostEstimate(
        flops=6 * m_pad * dim * inter_pad,
        transcendentals=m_pad * inter_pad,
        bytes_accessed=itemsize * ((1 + nsplit) * m_pad * dim
                                   + 3 * dim * inter_pad * m_tiles),
    )

    out = pl.pallas_call(
        _mlp_kernel,
        out_shape=jax.ShapeDtypeStruct((nsplit, m_pad, dim), x2d.dtype),
        grid_spec=pltpu.PrefetchScalarGridSpec(
            num_scalar_prefetch=0,
            grid=(nsplit, m_tiles, nt_split),   # reduction (inter) axis last
            in_specs=[
                pl.BlockSpec((tm, dim), lambda s, i, j: (i, 0)),
                pl.BlockSpec((tn, dim), lambda s, i, j: (s * nt_split + j, 0)),
                pl.BlockSpec((tn, dim), lambda s, i, j: (s * nt_split + j, 0)),
                pl.BlockSpec((dim, tn), lambda s, i, j: (0, s * nt_split + j)),
            ],
            out_specs=pl.BlockSpec((1, tm, dim), lambda s, i, j: (s, i, 0)),
            scratch_shapes=[pltpu.VMEM((tm, dim), jnp.float32)],
        ),
        compiler_params=pltpu.CompilerParams(
            dimension_semantics=("parallel", "parallel", "arbitrary"),
            vmem_limit_bytes=vmem_limit,
        ),
        cost_estimate=cost,
    )(xp, w1, w3, w2)

    out = out[0] if nsplit == 1 else out.sum(axis=0)
    return out[:m]


_TM_CANDIDATES = (2048, 1536, 1024, 768, 512, 384, 256, 192, 128, 96, 64, 48, 32, 16)
_TN_CANDIDATES = (1024, 768, 512, 384, 256, 128)


def _vmem_bytes(tm, tn, dim, itemsize):
    io = 2 * 2 * tm * dim * itemsize               # x + out tiles, double-buffered
    w = 3 * 2 * tn * dim * itemsize                # w1/w3/w2 tiles, double-buffered
    acc = tm * dim * 4                             # resident f32 accumulator
    temps = 3 * tm * tn * 4 + tm * tn * itemsize   # h1/h3/gated compiler temps
    return io + w + acc + temps


def _pick_tiles(m, inter, dim, itemsize, vmem_cap):
    budget = int(vmem_cap * 0.8)
    tm_cap = _round_up(max(m, 1), 16)
    tn_cap = _round_up(max(inter, 1), 128)
    tms = [t for t in _TM_CANDIDATES if t <= tm_cap] or [tm_cap]
    tns = [t for t in _TN_CANDIDATES if t <= tn_cap] or [tn_cap]
    for tm in tms:            # maximize tm first (arithmetic intensity ~ tm)
        for tn in tns:        # then the largest weight tile that still fits
            if _vmem_bytes(tm, tn, dim, itemsize) <= budget:
                return tm, tn
    return tms[-1], tns[-1]


def mlp_forward(x, w1, w2, w3, *, tm=None, tn=None):
    """SwiGLU MLP forward. x: (..., dim).
    w1, w3: (inter_dim, dim); w2: (dim, inter_dim)  (nn.Linear layout)."""
    orig_shape = x.shape
    dim = orig_shape[-1]
    x2d = x.reshape(-1, dim)
    m = x2d.shape[0]
    inter = w1.shape[0]
    itemsize = jnp.dtype(x.dtype).itemsize

    try:
        vmem_cap = int(pltpu.get_tpu_info().vmem_capacity_bytes)
    except Exception:
        vmem_cap = 64 * 1024 * 1024   # conservative default (v7x per-core VMEM)

    auto_tm, auto_tn = _pick_tiles(m, inter, dim, itemsize, vmem_cap)
    tm = auto_tm if tm is None else tm
    tn = auto_tn if tn is None else tn

    m_tiles = pl.cdiv(m, tm)
    nt = _round_up(inter, tn) // tn
    # Single-M-tile (decode-like) case: split the inter axis on a leading
    # "parallel" grid axis so both TensorCores of a v7x chip stream half the
    # weights each; harmless (serialized) on 1-TC chips.
    nsplit = 2 if (m_tiles == 1 and nt >= 2) else 1

    est = _vmem_bytes(tm, tn, dim, itemsize)
    vmem_limit = int(min(vmem_cap, max(32 * 1024 * 1024, est + (8 << 20))))

    out = _mlp_2d(x2d, w1, w2, w3, tm=int(tm), tn=int(tn), nsplit=nsplit,
                  vmem_limit=vmem_limit)
    return out.reshape(orig_shape)


def mlp_reference(x, w1, w2, w3):
    h1 = x @ w1.T
    h3 = x @ w3.T
    return (jax.nn.silu(h1) * h3) @ w2.T


if __name__ == "__main__":
    key = jax.random.PRNGKey(0)
    k_x, k_w1, k_w2, k_w3 = jax.random.split(key, 4)

    batch, seq = 2, 8
    dim, inter_dim = 128, 256

    x = jax.random.normal(k_x, (batch, seq, dim), dtype=jnp.float32)
    # nn.Linear weight layout: (out_features, in_features); deterministic init.
    w1 = jax.random.normal(k_w1, (inter_dim, dim), dtype=jnp.float32) * 0.02
    w2 = jax.random.normal(k_w2, (dim, inter_dim), dtype=jnp.float32) * 0.02
    w3 = jax.random.normal(k_w3, (inter_dim, dim), dtype=jnp.float32) * 0.02

    y_ref = mlp_reference(x, w1, w2, w3)

    # f32 path, auto tiling (single inter chunk).
    y = jax.block_until_ready(mlp_forward(x, w1, w2, w3))
    assert y.shape == x.shape
    assert jnp.allclose(y, y_ref, atol=1e-4, rtol=1e-4), "f32 mismatch vs reference"

    # Force the split-inter (decode / dual-TensorCore) path: tn=128 -> 2 inter
    # chunks with a single M tile -> nsplit=2, partials summed outside.
    y_split = jax.block_until_ready(mlp_forward(x, w1, w2, w3, tn=128))
    assert jnp.allclose(y_split, y_ref, atol=1e-4, rtol=1e-4), \
        "split-path mismatch vs reference"

    # bf16 path: bf16 MXU operands with f32 accumulation (looser tolerance).
    yb = jax.block_until_ready(
        mlp_forward(x.astype(jnp.bfloat16), w1.astype(jnp.bfloat16),
                    w2.astype(jnp.bfloat16), w3.astype(jnp.bfloat16)))
    assert jnp.allclose(yb.astype(jnp.float32), y_ref, atol=5e-2, rtol=5e-2), \
        "bf16 path mismatch vs reference"

    print("KERNEL_OK")
</pallas_src>

<mosaic_0001>
module attributes {stable_mosaic.version = 11 : i64} {
  func.func @_mlp_kernel(%arg0: i32, %arg1: i32, %arg2: i32, %arg3: memref<16x128xf32, #tpu.memory_space<vmem>>, %arg4: memref<256x128xf32, #tpu.memory_space<vmem>>, %arg5: memref<256x128xf32, #tpu.memory_space<vmem>>, %arg6: memref<128x256xf32, #tpu.memory_space<vmem>>, %arg7: memref<1x16x128xf32, #tpu.memory_space<vmem>>, %arg8: memref<16x128xf32, #tpu.memory_space<vmem>>) attributes {dimension_semantics = [#tpu.dimension_semantics<parallel>, #tpu.dimension_semantics<parallel>, #tpu.dimension_semantics<arbitrary>], iteration_bounds = array<i64: 1, 1, 1>, scalar_prefetch = 0 : i64, scratch_operands = 1 : i64, tpu.core_type = #tpu.core_type<tc>, window_params = [{transform_indices = @transform_0, window_bounds = array<i64: 16, 128>}, {transform_indices = @transform_1, window_bounds = array<i64: 256, 128>}, {transform_indices = @transform_2, window_bounds = array<i64: 256, 128>}, {transform_indices = @transform_3, window_bounds = array<i64: 128, 256>}, {transform_indices = @transform_4, window_bounds = array<i64: 1, 16, 128>}]} {
    %c0_i32 = arith.constant 0 : i32
    %0 = arith.cmpi eq, %arg2, %c0_i32 : i32
    %1 = arith.extui %0 : i1 to i32
    %c0_i32_0 = arith.constant 0 : i32
    %2 = arith.cmpi ne, %1, %c0_i32_0 : i32
    scf.if %2 {
      %cst_17 = arith.constant 0.000000e+00 : f32
      %23 = vector.broadcast %cst_17 : f32 to vector<16x128xf32>
      %c0_18 = arith.constant 0 : index
      %c0_19 = arith.constant 0 : index
      %24 = vector.load %arg8[%c0_18, %c0_19] : memref<16x128xf32, #tpu.memory_space<vmem>>, vector<16x128xf32>
      tpu.vector_store %arg8[%c0_18, %c0_19], %23 {strides = array<i32>} : memref<16x128xf32, #tpu.memory_space<vmem>>, vector<16x128xf32>,
    } else {
    }
    %c0 = arith.constant 0 : index
    %c0_1 = arith.constant 0 : index
    %3 = vector.load %arg3[%c0, %c0_1] : memref<16x128xf32, #tpu.memory_space<vmem>>, vector<16x128xf32>
    %c0_2 = arith.constant 0 : index
    %c0_3 = arith.constant 0 : index
    %4 = vector.load %arg4[%c0_2, %c0_3] : memref<256x128xf32, #tpu.memory_space<vmem>>, vector<256x128xf32>
    %cst = arith.constant dense<0.000000e+00> : vector<16x256xf32>
    %5 = tpu.matmul %3, %4, %cst {dimension_numbers = #tpu.dot_dimension_numbers<[1], [1], [0], [0], [0, 0, 1, 0], [], []>} : vector<16x128xf32>, vector<256x128xf32>, vector<16x256xf32> -> vector<16x256xf32>
    %c0_4 = arith.constant 0 : index
    %c0_5 = arith.constant 0 : index
    %6 = vector.load %arg5[%c0_4, %c0_5] : memref<256x128xf32, #tpu.memory_space<vmem>>, vector<256x128xf32>
    %cst_6 = arith.constant dense<0.000000e+00> : vector<16x256xf32>
    %7 = tpu.matmul %3, %6, %cst_6 {dimension_numbers = #tpu.dot_dimension_numbers<[1], [1], [0], [0], [0, 0, 1, 0], [], []>} : vector<16x128xf32>, vector<256x128xf32>, vector<16x256xf32> -> vector<16x256xf32>
    %8 = arith.negf %5 : vector<16x256xf32>
    %9 = math.exp %8 : vector<16x256xf32>
    %cst_7 = arith.constant 1.000000e+00 : f32
    %10 = vector.broadcast %cst_7 : f32 to vector<16x256xf32>
    %11 = arith.addf %10, %9 : vector<16x256xf32>
    %12 = arith.divf %10, %11 : vector<16x256xf32>
    %13 = arith.mulf %5, %12 : vector<16x256xf32>
    %14 = arith.mulf %13, %7 : vector<16x256xf32>
    %c0_8 = arith.constant 0 : index
    %c0_9 = arith.constant 0 : index
    %15 = vector.load %arg8[%c0_8, %c0_9] : memref<16x128xf32, #tpu.memory_space<vmem>>, vector<16x128xf32>
    %c0_10 = arith.constant 0 : index
    %c0_11 = arith.constant 0 : index
    %16 = vector.load %arg6[%c0_10, %c0_11] : memref<128x256xf32, #tpu.memory_space<vmem>>, vector<128x256xf32>
    %cst_12 = arith.constant dense<0.000000e+00> : vector<16x128xf32>
    %17 = tpu.matmul %14, %16, %cst_12 {dimension_numbers = #tpu.dot_dimension_numbers<[1], [1], [0], [0], [0, 0, 1, 0], [], []>} : vector<16x256xf32>, vector<128x256xf32>, vector<16x128xf32> -> vector<16x128xf32>
    %18 = arith.addf %15, %17 : vector<16x128xf32>
    %c0_13 = arith.constant 0 : index
    %c0_14 = arith.constant 0 : index
    %19 = vector.load %arg8[%c0_13, %c0_14] : memref<16x128xf32, #tpu.memory_space<vmem>>, vector<16x128xf32>
    tpu.vector_store %arg8[%c0_13, %c0_14], %18 {strides = array<i32>} : memref<16x128xf32, #tpu.memory_space<vmem>>, vector<16x128xf32>,
    %c0_i32_15 = arith.constant 0 : i32
    %20 = arith.cmpi eq, %arg2, %c0_i32_15 : i32
    %21 = arith.extui %20 : i1 to i32
    %c0_i32_16 = arith.constant 0 : i32
    %22 = arith.cmpi ne, %21, %c0_i32_16 : i32
    scf.if %22 {
      %c0_17 = arith.constant 0 : index
      %c0_18 = arith.constant 0 : index
      %23 = vector.load %arg8[%c0_17, %c0_18] : memref<16x128xf32, #tpu.memory_space<vmem>>, vector<16x128xf32>
      %24 = vector.shape_cast %23 : vector<16x128xf32> to vector<1x16x128xf32>
      %c0_19 = arith.constant 0 : index
      %c0_20 = arith.constant 0 : index
      %c0_21 = arith.constant 0 : index
      %25 = vector.load %arg7[%c0_19, %c0_20, %c0_21] : memref<1x16x128xf32, #tpu.memory_space<vmem>>, vector<1x16x128xf32>
      tpu.vector_store %arg7[%c0_19, %c0_20, %c0_21], %24 {strides = array<i32>} : memref<1x16x128xf32, #tpu.memory_space<vmem>>, vector<1x16x128xf32>,
    } else {
    }
    return
  }
  func.func @transform_0(%arg0: i32, %arg1: i32, %arg2: i32) -> (i32, i32) {
    %c0_i32 = arith.constant 0 : i32
    %c0_i32_0 = arith.constant 0 : i32
    return %arg1, %c0_i32 : i32, i32
  }
  func.func @transform_1(%arg0: i32, %arg1: i32, %arg2: i32) -> (i32, i32) {
    %c1_i32 = arith.constant 1 : i32
    %0 = arith.muli %arg0, %c1_i32 : i32
    %1 = arith.addi %0, %arg2 : i32
    %c0_i32 = arith.constant 0 : i32
    %c0_i32_0 = arith.constant 0 : i32
    return %1, %c0_i32 : i32, i32
  }
  func.func @transform_2(%arg0: i32, %arg1: i32, %arg2: i32) -> (i32, i32) {
    %c1_i32 = arith.constant 1 : i32
    %0 = arith.muli %arg0, %c1_i32 : i32
    %1 = arith.addi %0, %arg2 : i32
    %c0_i32 = arith.constant 0 : i32
    %c0_i32_0 = arith.constant 0 : i32
    return %1, %c0_i32 : i32, i32
  }
  func.func @transform_3(%arg0: i32, %arg1: i32, %arg2: i32) -> (i32, i32) {
    %c1_i32 = arith.constant 1 : i32
    %0 = arith.muli %arg0, %c1_i32 : i32
    %1 = arith.addi %0, %arg2 : i32
    %c0_i32 = arith.constant 0 : i32
    %c0_i32_0 = arith.constant 0 : i32
    return %c0_i32, %1 : i32, i32
  }
  func.func @transform_4(%arg0: i32, %arg1: i32, %arg2: i32) -> (i32, i32, i32) {
    %c0_i32 = arith.constant 0 : i32
    %c0_i32_0 = arith.constant 0 : i32
    return %arg0, %arg1, %c0_i32 : i32, i32, i32
  }
}

</mosaic_0001>

<bundles_post_ra>
// kernel: _mlp_2d.1
= control target key start
LH: loop header
LB: loop body
LE: loop exit
PB: predicated region body
PF: predicated region fallthrough
CT: control target
= control target key end

     0   :  { %9 = vsyncpa [#allocation4], 0  ;;  %s945_s0 = inlined_call_operand.hbm [shape: f32[16,128], index: 0, kind: input, shape index: {}]   ;;  %s946_s1 = inlined_call_operand.hbm [shape: f32[256,128], index: 1, kind: input, shape index: {}]   ;;  %s947_s2 = inlined_call_operand.hbm [shape: f32[256,128], index: 2, kind: input, shape index: {}]   ;;  %s948_s3 = inlined_call_operand.hbm [shape: f32[128,256], index: 3, kind: input, shape index: {}]   ;;  %s949_s4 = inlined_call_operand.hbm [shape: f32[1,16,128], index: 4, kind: output, shape index: {}]  }
   0x1   :  { %10 = vsyncpa [#allocation7], 0 }
   0x2   :  { %11 = vsyncpa [#allocation10], 0 }
   0x3   :  { %12 = vsyncpa [#allocation5], 0  ;;  %s819_s15 = smov [#allocation6]   ;;  %s820_s17 = smov [#allocation3]  }
   0x4   :  { %s34_s16 = sshll.u32 %s819_s15, 4  ;;  %s18_s18 = sshll.u32 %s820_s17, 4  ;;  %s35_s16 = int_to_ptr.vmem [resolvable:$true] %s34_s16  ;;  %s853_s18 = int_to_ptr.vmem [resolvable:$true] %s18_s18 }
   0x5   :  { %s701_s21 = scalar_lea.hbm %s946_s1, 4096 }
   0x6   :  { %p702_p0 = scmp.ne.s32.totalorder %s946_s1, %s701_s21  ;;  %p705_p1 = scmp.lt.u32.totalorder %s701_s21, %s946_s1 }
   0x8   :  { %p707_p2 = pnand %p705_p1, %p702_p0 }
   0xa   :  { %710 = shalt.err (!%p707_p2)
}
   0xb   :  { %s711_s26 = scalar_lea.vmem %s35_s16, 4096  ;;  %p716_p4 = scmp.lt.s32.totalorder %s35_s16, %s35_s16 }
   0xc   :  { %p712_p3 = scmp.ne.s32.totalorder %s35_s16, %s711_s26  ;;  %p717_p5 = scmp.lt.s32.totalorder %s711_s26, %s711_s26 }
   0xe   :  { %p718_p6 = por %p717_p5, %p716_p4 }
  0x10   :  { %p719_p7 = pnand %p718_p6, %p712_p3 }
  0x12   :  { %722 = shalt.err (!%p719_p7)
}
  0x13   :  { %s821_s27 = smov 128   ;;  %s822_s28 = smov 8  }
  0x14   :  { %40 = dma.hbm_to_vmem [thread:$0]  %s946_s1, 4096, %s35_s16, [#allocation7], %s821_s27, %s821_s27, %s822_s28  }
  0x15   :  { %s723_s7 = scalar_lea.hbm %s945_s0, 256 }
  0x16   :  { %p724_p8 = scmp.ne.s32.totalorder %s945_s0, %s723_s7  ;;  %p727_p9 = scmp.lt.u32.totalorder %s723_s7, %s945_s0 }
  0x18   :  { %p729_p10 = pnand %p727_p9, %p724_p8 }
  0x1a   :  { %732 = shalt.err (!%p729_p10)
}
  0x1b   :  { %s733_s12 = scalar_lea.vmem %s853_s18, 256  ;;  %p738_p12 = scmp.lt.s32.totalorder %s853_s18, %s853_s18 }
  0x1c   :  { %p734_p11 = scmp.ne.s32.totalorder %s853_s18, %s733_s12  ;;  %p739_p13 = scmp.lt.s32.totalorder %s733_s12, %s733_s12 }
  0x1e   :  { %p740_p0 = por %p739_p13, %p738_p12 }
  0x20   :  { %p741_p1 = pnand %p740_p0, %p734_p11 }
  0x22   :  { %744 = shalt.err (!%p741_p1)
}
  0x23   :  { %24 = dma.hbm_to_vmem [thread:$0]  %s945_s0, 256, %s853_s18, [#allocation4], %s821_s27, %s821_s27, %s822_s28  }
  0x24   :  { %s823_s14 = smov [#allocation8]   ;;  %s824_s16 = smov [#allocation9]  }
  0x25   :  { %s50_s15 = sshll.u32 %s823_s14, 4  ;;  %s66_s17 = sshll.u32 %s824_s16, 4  ;;  %s51_s15 = int_to_ptr.vmem [resolvable:$true] %s50_s15  ;;  %s890_s17 = int_to_ptr.vmem [resolvable:$true] %s66_s17 }
  0x26   :  { %s745_s21 = scalar_lea.hbm %s947_s2, 4096 }
  0x27   :  { %p746_p2 = scmp.ne.s32.totalorder %s947_s2, %s745_s21  ;;  %p749_p3 = scmp.lt.u32.totalorder %s745_s21, %s947_s2 }
  0x29   :  { %p751_p4 = pnand %p749_p3, %p746_p2 }
  0x2b   :  { %754 = shalt.err (!%p751_p4)
}
  0x2c   :  { %s755_s0 = scalar_lea.vmem %s51_s15, 4096  ;;  %p760_p6 = scmp.lt.s32.totalorder %s51_s15, %s51_s15 }
  0x2d   :  { %p756_p5 = scmp.ne.s32.totalorder %s51_s15, %s755_s0  ;;  %p761_p7 = scmp.lt.s32.totalorder %s755_s0, %s755_s0 }
  0x2f   :  { %p762_p8 = por %p761_p7, %p760_p6 }
  0x31   :  { %p763_p9 = pnand %p762_p8, %p756_p5 }
  0x33   :  { %766 = shalt.err (!%p763_p9)
}
  0x34   :  { %56 = dma.hbm_to_vmem [thread:$0]  %s947_s2, 4096, %s51_s15, [#allocation7], %s821_s27, %s821_s27, %s822_s28  }
  0x35   :  { %s767_s5 = scalar_lea.hbm %s948_s3, 4096 }
  0x36   :  { %p768_p10 = scmp.ne.s32.totalorder %s948_s3, %s767_s5  ;;  %p771_p11 = scmp.lt.u32.totalorder %s767_s5, %s948_s3 }
  0x38   :  { %p773_p12 = pnand %p771_p11, %p768_p10 }
  0x3a   :  { %776 = shalt.err (!%p773_p12)
}
  0x3b   :  { %s777_s10 = scalar_lea.vmem %s890_s17, 4096  ;;  %p782_p0 = scmp.lt.s32.totalorder %s890_s17, %s890_s17 }
  0x3c   :  { %p778_p13 = scmp.ne.s32.totalorder %s890_s17, %s777_s10  ;;  %p783_p1 = scmp.lt.s32.totalorder %s777_s10, %s777_s10 }
  0x3e   :  { %p784_p2 = por %p783_p1, %p782_p0 }
  0x40   :  { %p785_p3 = pnand %p784_p2, %p778_p13 }
  0x42   :  { %788 = shalt.err (!%p785_p3)
}
  0x43   :  { %s825_s2 = smov 256   ;;  %s826_s11 = smov 16  }
  0x44   :  { %72 = dma.hbm_to_vmem [thread:$0]  %s948_s3, 4096, %s890_s17, [#allocation10], %s825_s2, %s825_s2, %s826_s11  }
  0x45   :  { %811 = dma.done.wait [#allocation4], 256  }
  0x46   :  { %812 = vsyncadd [#allocation4], 4294967040 }
  0x47   :  { %813 = dma.done.wait [#allocation7], 8192  }
  0x48   :  { %814 = vsyncadd [#allocation7], 4294959104 }
  0x49   :  { %815 = dma.done.wait [#allocation10], 4096  }
  0x4a   :  { %816 = vsyncadd [#allocation10], 4294963200  ;;  %v115_v0 = vld [vmem:[#allocation6 + $0x80] sm:$0xff]  ;;  %v116_v1 = vld [vmem:[#allocation6 + $0x88] sm:$0xff]  ;;  %s827_s3 = smov [#allocation11]  }
  0x4b   :  { %v99_v2 = vld [vmem:[#allocation6] sm:$0xff]  ;;  %v564_v3 = vpack.c.bf16 %v116_v1, %v115_v0  ;;  %v100_v4 = vld [vmem:[#allocation6 + $0x8] sm:$0xff]  ;;  %v117_v5 = vld [vmem:[#allocation6 + $0x90] sm:$0xff]  ;;  %s474_s13 = sshll.u32 %s827_s3, 4  ;;  %s475_s13 = int_to_ptr.vmem [resolvable:$true] %s474_s13 }
  0x4c   :  { %v118_v6 = vld [vmem:[#allocation6 + $0x98] sm:$0xff]  ;;  %v566_v7 = vpack.c.bf16 %v100_v4, %v99_v2  ;;  %v101_v9 = vld [vmem:[#allocation6 + $0x10] sm:$0xff]  ;;  %v119_v11 = vld [vmem:[#allocation6 + $0xa0] sm:$0xff]  ;;  %s789_s14 = scalar_lea.vmem %s475_s13, 256  ;;  %p794_p5 = scmp.lt.s32.totalorder %s475_s13, %s475_s13 }
  0x4d   :  { %v568_v8 = vpack.c.bf16 %v118_v6, %v117_v5  ;;  %565 = vmatprep.subr.bf16.mxu0 %v564_v3  ;;  %v102_v10 = vld [vmem:[#allocation6 + $0x18] sm:$0xff]  ;;  %v224_v12 = vld [vmem:[#allocation8 + $0x80] sm:$0xff]  ;;  %v225_v13 = vld [vmem:[#allocation8 + $0x88] sm:$0xff]  ;;  %p790_p4 = scmp.ne.s32.totalorder %s475_s13, %s789_s14  ;;  %p795_p6 = scmp.lt.s32.totalorder %s789_s14, %s789_s14 }
  0x4e   :  { %567 = vmatpush3.bf16.xpose.msra.mxu0 %v566_v7  ;;  %v120_v14 = vld [vmem:[#allocation6 + $0xa8] sm:$0xff]  ;;  %v596_v15 = vpack.c.bf16 %v225_v13, %v224_v12  ;;  %v208_v16 = vld [vmem:[#allocation8] sm:$0xff]  ;;  %v570_v19 = vpack.c.bf16 %v102_v10, %v101_v9  ;;  %v226_v20 = vld [vmem:[#allocation8 + $0x90] sm:$0xff] }
  0x4f   :  { %569 = vmatprep.subr.bf16.mxu0 %v568_v8  ;;  %v209_v17 = vld [vmem:[#allocation8 + $0x8] sm:$0xff]  ;;  %v227_v21 = vld [vmem:[#allocation8 + $0x98] sm:$0xff]  ;;  %v572_v22 = vpack.c.bf16 %v120_v14, %v119_v11  ;;  %v210_v24 = vld [vmem:[#allocation8 + $0x10] sm:$0xff]  ;;  %p796_p7 = por %p795_p6, %p794_p5 }
  0x50   :  { %v598_v18 = vpack.c.bf16 %v209_v17, %v208_v16  ;;  %597 = vmatprep.subr.bf16.mxu1 %v596_v15  ;;  %v600_v23 = vpack.c.bf16 %v227_v21, %v226_v20  ;;  %v211_v25 = vld [vmem:[#allocation8 + $0x18] sm:$0xff]  ;;  %v228_v26 = vld [vmem:[#allocation8 + $0xa0] sm:$0xff]  ;;  %v229_v27 = vld [vmem:[#allocation8 + $0xa8] sm:$0xff] }
  0x51   :  { %v103_v28 = vld [vmem:[#allocation6 + $0x20] sm:$0xff]  ;;  %v104_v29 = vld [vmem:[#allocation6 + $0x28] sm:$0xff]  ;;  %v602_v30 = vpack.c.bf16 %v211_v25, %v210_v24  ;;  %v121_v31 = vld [vmem:[#allocation6 + $0xb0] sm:$0xff]  ;;  %v604_v33 = vpack.c.bf16 %v229_v27, %v228_v26  ;;  %p797_p8 = pnand %p796_p7, %p790_p4 }
  0x52   :  { %599 = vmatpush3.bf16.xpose.msra.mxu1 %v598_v18  ;;  %v122_v32 = vld [vmem:[#allocation6 + $0xb8] sm:$0xff]  ;;  %v574_v34 = vpack.c.bf16 %v104_v29, %v103_v28  ;;  %v924_v36 = vld [vmem:[#allocation3] sm:$0xff]  ;;  %v212_v37 = vld [vmem:[#allocation8 + $0x20] sm:$0xff] }
  0x53   :  { %601 = vmatprep.subr.bf16.mxu1 %v600_v23  ;;  %v576_v35 = vpack.c.bf16 %v122_v32, %v121_v31  ;;  %v213_v38 = vld [vmem:[#allocation8 + $0x28] sm:$0xff]  ;;  %524 = vmatprep.mubr.f32.mxu0 %v924_v36  ;;  %v230_v39 = vld [vmem:[#allocation8 + $0xb0] sm:$0xff]  ;;  %v231_v40 = vld [vmem:[#allocation8 + $0xb8] sm:$0xff] }
  0x54   :  { %560 = vmatprep.mubr.f32.mxu1 %v924_v36  ;;  %v105_v41 = vld [vmem:[#allocation6 + $0x30] sm:$0xff]  ;;  %v106_v42 = vld [vmem:[#allocation6 + $0x38] sm:$0xff]  ;;  %v606_v43 = vpack.c.bf16 %v213_v38, %v212_v37  ;;  %v123_v44 = vld [vmem:[#allocation6 + $0xc0] sm:$0xff]  ;;  %v608_v46 = vpack.c.bf16 %v231_v40, %v230_v39 }
  0x55   :  { %v124_v45 = vld [vmem:[#allocation6 + $0xc8] sm:$0xff]  ;;  %v578_v47 = vpack.c.bf16 %v106_v42, %v105_v41  ;;  %v214_v49 = vld [vmem:[#allocation8 + $0x30] sm:$0xff]  ;;  %v215_v50 = vld [vmem:[#allocation8 + $0x38] sm:$0xff] }
  0x56   :  { %571 = vmatpush3.bf16.xpose.msra.mxu0 %v570_v19  ;;  %v580_v48 = vpack.c.bf16 %v124_v45, %v123_v44  ;;  %v232_v51 = vld [vmem:[#allocation8 + $0xc0] sm:$0xff]  ;;  %v233_v52 = vld [vmem:[#allocation8 + $0xc8] sm:$0xff]  ;;  %v610_v55 = vpack.c.bf16 %v215_v50, %v214_v49  ;;  %v125_v56 = vld [vmem:[#allocation6 + $0xd0] sm:$0xff] }
  0x57   :  { %573 = vmatprep.subr.bf16.mxu0 %v572_v22  ;;  %v107_v53 = vld [vmem:[#allocation6 + $0x40] sm:$0xff]  ;;  %v108_v54 = vld [vmem:[#allocation6 + $0x48] sm:$0xff]  ;;  %v126_v57 = vld [vmem:[#allocation6 + $0xd8] sm:$0xff]  ;;  %v612_v58 = vpack.c.bf16 %v233_v52, %v232_v51 }
  0x58   :  { %v582_v59 = vpack.c.bf16 %v108_v54, %v107_v53  ;;  %v584_v60 = vpack.c.bf16 %v126_v57, %v125_v56  ;;  %v216_v61 = vld [vmem:[#allocation8 + $0x40] sm:$0xff]  ;;  %v217_v62 = vld [vmem:[#allocation8 + $0x48] sm:$0xff]  ;;  %v234_v63 = vld [vmem:[#allocation8 + $0xd0] sm:$0xff] }
  0x59   :  { %v235_v0 = vld [vmem:[#allocation8 + $0xd8] sm:$0xff]  ;;  %v109_v1 = vld [vmem:[#allocation6 + $0x50] sm:$0xff]  ;;  %v614_v3 = vpack.c.bf16 %v217_v62, %v216_v61  ;;  %v127_v4 = vld [vmem:[#allocation6 + $0xe0] sm:$0xff] }
  0x5a   :  { %603 = vmatpush3.bf16.xpose.msra.mxu1 %v602_v30  ;;  %v110_v2 = vld [vmem:[#allocation6 + $0x58] sm:$0xff]  ;;  %v128_v5 = vld [vmem:[#allocation6 + $0xe8] sm:$0xff]  ;;  %v616_v6 = vpack.c.bf16 %v235_v0, %v234_v63  ;;  %v218_v9 = vld [vmem:[#allocation8 + $0x50] sm:$0xff] }
  0x5b   :  { %605 = vmatprep.subr.bf16.mxu1 %v604_v33  ;;  %v586_v7 = vpack.c.bf16 %v110_v2, %v109_v1  ;;  %v588_v8 = vpack.c.bf16 %v128_v5, %v127_v4  ;;  %v219_v10 = vld [vmem:[#allocation8 + $0x58] sm:$0xff]  ;;  %v236_v11 = vld [vmem:[#allocation8 + $0xe0] sm:$0xff]  ;;  %v237_v12 = vld [vmem:[#allocation8 + $0xe8] sm:$0xff] }
  0x5c   :  { %v111_v13 = vld [vmem:[#allocation6 + $0x60] sm:$0xff]  ;;  %v112_v14 = vld [vmem:[#allocation6 + $0x68] sm:$0xff]  ;;  %v618_v15 = vpack.c.bf16 %v219_v10, %v218_v9  ;;  %v129_v16 = vld [vmem:[#allocation6 + $0xf0] sm:$0xff]  ;;  %v620_v18 = vpack.c.bf16 %v237_v12, %v236_v11 }
  0x5d   :  { %v130_v17 = vld [vmem:[#allocation6 + $0xf8] sm:$0xff]  ;;  %v590_v19 = vpack.c.bf16 %v112_v14, %v111_v13  ;;  %v220_v21 = vld [vmem:[#allocation8 + $0x60] sm:$0xff]  ;;  %v221_v22 = vld [vmem:[#allocation8 + $0x68] sm:$0xff] }
  0x5e   :  { %575 = vmatpush3.bf16.xpose.msra.mxu0 %v574_v34  ;;  %v592_v20 = vpack.c.bf16 %v130_v17, %v129_v16  ;;  %v238_v23 = vld [vmem:[#allocation8 + $0xf0] sm:$0xff]  ;;  %v239_v24 = vld [vmem:[#allocation8 + $0xf8] sm:$0xff]  ;;  %v622_v27 = vpack.c.bf16 %v221_v22, %v220_v21  ;;  %v352_v29 = vld [vmem:[#allocation9 + $0x8] sm:$0xff] }
  0x5f   :  { %577 = vmatprep.subr.bf16.mxu0 %v576_v35  ;;  %v113_v25 = vld [vmem:[#allocation6 + $0x70] sm:$0xff]  ;;  %v114_v26 = vld [vmem:[#allocation6 + $0x78] sm:$0xff]  ;;  %v624_v28 = vpack.c.bf16 %v239_v24, %v238_v23  ;;  %v351_v37 = vld [vmem:[#allocation9] sm:$0xff] }
  0x60   :  { %v354_v30 = vld [vmem:[#allocation9 + $0x18] sm:$0xff]  ;;  %v594_v31 = vpack.c.bf16 %v114_v26, %v113_v25  ;;  %v222_v33 = vld [vmem:[#allocation8 + $0x70] sm:$0xff]  ;;  %v356_v39 = vld [vmem:[#allocation9 + $0x28] sm:$0xff] }
  0x61   :  { %v628_v32 = vpack.c.bf16 %v354_v30, %v352_v29  ;;  %v223_v34 = vld [vmem:[#allocation8 + $0x78] sm:$0xff]  ;;  %v353_v38 = vld [vmem:[#allocation9 + $0x10] sm:$0xff]  ;;  %v355_v44 = vld [vmem:[#allocation9 + $0x20] sm:$0xff] }
  0x62   :  { %607 = vmatpush3.bf16.xpose.msra.mxu1 %v606_v43  ;;  %v626_v35 = vpack.c.bf16 %v223_v34, %v222_v33  ;;  %v358_v40 = vld [vmem:[#allocation9 + $0x38] sm:$0xff]  ;;  %v630_v41 = vpack.c.bf16 %v353_v38, %v351_v37  ;;  %v357_v45 = vld [vmem:[#allocation9 + $0x30] sm:$0xff]  ;;  %v359_v50 = vld [vmem:[#allocation9 + $0x40] sm:$0xff] }
  0x63   :  { %609 = vmatprep.subr.bf16.mxu1 %v608_v46  ;;  %v98_v42 = vld [vmem:[#allocation3 + $0x8] sm:$0xff]  ;;  %v632_v43 = vpack.c.bf16 %v358_v40, %v356_v39  ;;  %v360_v46 = vld [vmem:[#allocation9 + $0x48] sm:$0xff]  ;;  %v361_v51 = vld [vmem:[#allocation9 + $0x50] sm:$0xff] }
  0x64   :  { %v364_v52 = vld [vmem:[#allocation9 + $0x68] sm:$0xff]  ;;  %v366_v53 = vld [vmem:[#allocation9 + $0x78] sm:$0xff]  ;;  %v638_v54 = vpack.c.bf16 %v361_v51, %v359_v50  ;;  %v363_v56 = vld [vmem:[#allocation9 + $0x60] sm:$0xff] }
  0x65   :  { %v367_v61 = vld [vmem:[#allocation9 + $0x80] sm:$0xff]  ;;  %v369_v62 = vld [vmem:[#allocation9 + $0x90] sm:$0xff]  ;;  %v372_v0 = vld [vmem:[#allocation9 + $0xa8] sm:$0xff] }
  0x66   :  { %579 = vmatpush3.bf16.xpose.msra.mxu0 %v578_v47  ;;  %v362_v47 = vld [vmem:[#allocation9 + $0x58] sm:$0xff]  ;;  %v646_v63 = vpack.c.bf16 %v369_v62, %v367_v61  ;;  %v373_v4 = vld [vmem:[#allocation9 + $0xb0] sm:$0xff]  ;;  %v375_v9 = vld [vmem:[#allocation9 + $0xc0] sm:$0xff] }
  0x67   :  { %581 = vmatprep.subr.bf16.mxu0 %v580_v48  ;;  %v634_v48 = vpack.c.bf16 %v357_v45, %v355_v44  ;;  %v636_v49 = vpack.c.bf16 %v362_v47, %v360_v46  ;;  %v374_v1 = vld [vmem:[#allocation9 + $0xb8] sm:$0xff]  ;;  %v377_v10 = vld [vmem:[#allocation9 + $0xd0] sm:$0xff]  ;;  %v380_v12 = vld [vmem:[#allocation9 + $0xe8] sm:$0xff] }
  0x68   :  { %v648_v2 = vpack.c.bf16 %v374_v1, %v372_v0  ;;  %v654_v11 = vpack.c.bf16 %v377_v10, %v375_v9  ;;  %v382_v13 = vld [vmem:[#allocation9 + $0xf8] sm:$0xff]  ;;  %v381_v16 = vld [vmem:[#allocation9 + $0xf0] sm:$0xff] }
  0x69   :  { %v656_v14 = vpack.c.bf16 %v382_v13, %v380_v12 }
  0x6a   :  { %611 = vmatpush3.bf16.xpose.msra.mxu1 %v610_v55  ;;  %v640_v55 = vpack.c.bf16 %v366_v53, %v364_v52 }
  0x6b   :  { %613 = vmatprep.subr.bf16.mxu1 %v612_v58  ;;  %v368_v58 = vld [vmem:[#allocation9 + $0x88] sm:$0xff] }
  0x6e   :  { %583 = vmatpush3.bf16.xpose.msra.mxu0 %v582_v59  ;;  %v370_v59 = vld [vmem:[#allocation9 + $0x98] sm:$0xff] }
  0x6f   :  { %585 = vmatprep.subr.bf16.mxu0 %v584_v60  ;;  %v644_v60 = vpack.c.bf16 %v370_v59, %v368_v58 }
  0x72   :  { %615 = vmatpush3.bf16.xpose.msra.mxu1 %v614_v3  ;;  %v371_v3 = vld [vmem:[#allocation9 + $0xa0] sm:$0xff] }
  0x73   :  { %617 = vmatprep.subr.bf16.mxu1 %v616_v6  ;;  %v650_v5 = vpack.c.bf16 %v373_v4, %v371_v3  ;;  %v376_v6 = vld [vmem:[#allocation9 + $0xc8] sm:$0xff] }
  0x76   :  { %587 = vmatpush3.bf16.xpose.msra.mxu0 %v586_v7  ;;  %v378_v7 = vld [vmem:[#allocation9 + $0xd8] sm:$0xff] }
  0x77   :  { %589 = vmatprep.subr.bf16.mxu0 %v588_v8  ;;  %v652_v8 = vpack.c.bf16 %v378_v7, %v376_v6 }
  0x7a   :  { %619 = vmatpush3.bf16.xpose.msra.mxu1 %v618_v15  ;;  %v379_v15 = vld [vmem:[#allocation9 + $0xe0] sm:$0xff] }
  0x7b   :  { %621 = vmatprep.subr.bf16.mxu1 %v620_v18  ;;  %v658_v17 = vpack.c.bf16 %v381_v16, %v379_v15 }
  0x7e   :  { %591 = vmatpush3.bf16.xpose.msra.mxu0 %v590_v19 }
  0x7f   :  { %593 = vmatprep.subr.bf16.mxu0 %v592_v20 }
  0x82   :  { %623 = vmatpush3.bf16.xpose.msra.mxu1 %v622_v27 }
  0x83   :  { %625 = vmatprep.subr.bf16.mxu1 %v624_v28 }
  0x86   :  { %595 = vmatpush3.bf16.xpose.msra.mxu0 %v594_v31 }
  0x87   :  { %629 = vmatprep.subr.bf16.mxu0 %v628_v32 }
  0x8a   :  { %627 = vmatpush3.bf16.xpose.msra.mxu1 %v626_v35 }
  0x8b   :  { %660 = vmatprep.subr.bf16.mxu1 %v628_v32 }
  0x8d   :  { %525 = vmatmul.mubr.f32.vlgmr.msra.gmra.mrb[0].mxu0 %v924_v36 }
  0x8e   :  { %526 = vmatprep.mubr.f32.mxu0 %v98_v42  ;;  %631 = vmatpush1.bf16.xpose.msra.mxu0 %v630_v41 }
  0x8f   :  { %633 = vmatprep.subr.bf16.mxu0 %v632_v43 }
  0x91   :  { %527 = vmatmul.mubr.f32.gmra.mrb[2].mxu0 %v98_v42  ;;  %561 = vmatmul.mubr.f32.vlgmr.msra.gmra.mrb[0].mxu1 %v924_v36  ;;  %v365_v36 = vld [vmem:[#allocation9 + $0x70] sm:$0xff] }
  0x92   :  { %562 = vmatprep.mubr.f32.mxu1 %v98_v42  ;;  %668 = vmatpush1.bf16.xpose.msra.mxu1 %v630_v41  ;;  %v642_v57 = vpack.c.bf16 %v365_v36, %v363_v56 }
  0x93   :  { %661 = vmatprep.subr.bf16.mxu1 %v632_v43 }
  0x95   :  { %563 = vmatmul.mubr.f32.gmra.mrb[2].mxu1 %v98_v42 }
  0x96   :  { %635 = vmatpush1.bf16.xpose.msra.mxu0 %v634_v48 }
  0x97   :  { %637 = vmatprep.subr.bf16.mxu0 %v636_v49 }
  0x9a   :  { %669 = vmatpush1.bf16.xpose.msra.mxu1 %v634_v48 }
  0x9b   :  { %662 = vmatprep.subr.bf16.mxu1 %v636_v49 }
  0x9e   :  { %639 = vmatpush1.bf16.xpose.msra.mxu0 %v638_v54 }
  0x9f   :  { %641 = vmatprep.subr.bf16.mxu0 %v640_v55 }
  0xa2   :  { %670 = vmatpush1.bf16.xpose.msra.mxu1 %v638_v54 }
  0xa3   :  { %663 = vmatprep.subr.bf16.mxu1 %v640_v55 }
  0xa6   :  { %643 = vmatpush1.bf16.xpose.msra.mxu0 %v642_v57 }
  0xa7   :  { %645 = vmatprep.subr.bf16.mxu0 %v644_v60 }
  0xaa   :  { %671 = vmatpush1.bf16.xpose.msra.mxu1 %v642_v57 }
  0xab   :  { %664 = vmatprep.subr.bf16.mxu1 %v644_v60 }
  0xae   :  { %647 = vmatpush1.bf16.xpose.msra.mxu0 %v646_v63 }
  0xaf   :  { %649 = vmatprep.subr.bf16.mxu0 %v648_v2 }
  0xb2   :  { %672 = vmatpush1.bf16.xpose.msra.mxu1 %v646_v63 }
  0xb3   :  { %665 = vmatprep.subr.bf16.mxu1 %v648_v2 }
  0xb6   :  { %651 = vmatpush1.bf16.xpose.msra.mxu0 %v650_v5 }
  0xb7   :  { %653 = vmatprep.subr.bf16.mxu0 %v652_v8 }
  0xba   :  { %673 = vmatpush1.bf16.xpose.msra.mxu1 %v650_v5 }
  0xbb   :  { %666 = vmatprep.subr.bf16.mxu1 %v652_v8 }
  0xbe   :  { %655 = vmatpush1.bf16.xpose.msra.mxu0 %v654_v11 }
  0xbf   :  { %657 = vmatprep.subr.bf16.mxu0 %v656_v14 }
  0xc2   :  { %674 = vmatpush1.bf16.xpose.msra.mxu1 %v654_v11 }
  0xc3   :  { %667 = vmatprep.subr.bf16.mxu1 %v656_v14 }
  0xc6   :  { %659 = vmatpush1.bf16.xpose.msra.mxu0 %v658_v17 }
  0xca   :  { %675 = vmatpush1.bf16.xpose.msra.mxu1 %v658_v17 }
 0x160   :  { %v197_v18 = vpop.f32.mrb[0].mxu0 }
 0x161   :  { %v488_v19 = vmul.f32 -1.442695, %v197_v18  ;;  %v199_v20 = vpop.f32.mrb[1].mxu0 }
 0x162   :  { %v489_v21 = vmul.f32 -1.442695, %v199_v20 }
 0x163   :  { %685 = vpow2.f32 %v488_v19 }
 0x164   :  { %687 = vpow2.f32 %v489_v21  ;;  %v203_v22 = vpop.f32.mrb[2].mxu0  ;;  %v306_v25 = vpop.f32.mrb[0].mxu1 }
 0x165   :  { %v490_v23 = vmul.f32 -1.442695, %v203_v22  ;;  %v205_v24 = vpop.f32.mrb[3].mxu0  ;;  %v308_v27 = vpop.f32.mrb[1].mxu1 }
 0x166   :  { %v491_v26 = vmul.f32 -1.442695, %v205_v24 }
 0x167   :  { %689 = vpow2.f32 %v490_v23 }
 0x168   :  { %691 = vpow2.f32 %v491_v26  ;;  %v312_v28 = vpop.f32.mrb[2].mxu1 }
 0x169   :  { %v314_v29 = vpop.f32.mrb[3].mxu1 }
 0x16d   :  { %v686_v30 = vpop.eup %685 }
 0x16e   :  { %v688_v31 = vpop.eup %687  ;;  %v329_v32 = vadd.f32 1.0, %v686_v30 }
 0x16f   :  { %v330_v33 = vadd.f32 1.0, %v688_v31 }
 0x170   :  { %693 = vrcp.f32 %v329_v32 }
 0x171   :  { %v690_v34 = vpop.eup %689  ;;  %695 = vrcp.f32 %v330_v33 }
 0x172   :  { %v692_v35 = vpop.eup %691  ;;  %v331_v37 = vadd.f32 1.0, %v690_v34 }
 0x173   :  { %v332_v38 = vadd.f32 1.0, %v692_v35 }
 0x174   :  { %697 = vrcp.f32 %v331_v37 }
 0x175   :  { %699 = vrcp.f32 %v332_v38 }
 0x17a   :  { %v694_v39 = vpop.eup %693 }
 0x17b   :  { %v696_v40 = vpop.eup %695  ;;  %v341_v41 = vmul.f32 %v694_v39, %v197_v18 }
 0x17c   :  { %v342_v42 = vmul.f32 %v696_v40, %v199_v20 }
 0x17d   :  { %v345_v43 = vmul.f32 %v341_v41, %v306_v25 }
 0x17e   :  { %v698_v44 = vpop.eup %697  ;;  %v346_v45 = vmul.f32 %v342_v42, %v308_v27 }
 0x17f   :  { %v700_v46 = vpop.eup %699  ;;  %v343_v47 = vmul.f32 %v698_v44, %v203_v22 }
 0x180   :  { %v344_v48 = vmul.f32 %v700_v46, %v205_v24  ;;  %447 = vmatprep.mubr.f32.mxu0 %v346_v45 }
 0x181   :  { %v347_v49 = vmul.f32 %v343_v47, %v312_v28  ;;  %448 = vmatmul.mubr.f32.vlgmr.msra.gmra.mrb[4].mxu0 %v345_v43 }
 0x182   :  { %v348_v50 = vmul.f32 %v344_v48, %v314_v29 }
 0x184   :  { %452 = vmatprep.mubr.f32.mxu1 %v348_v50 }
 0x185   :  { %453 = vmatmul.mubr.f32.vlgmr.msra.gmra.mrb[4].mxu1 %v347_v49 }
 0x254   :  { %v449_v51 = vpop.f32.mrb[4].mxu0 }
 0x255   :  { %467 = vst [vmem:[#allocation11] sm:$0xff] %v449_v51  ;;  %v451_v52 = vpop.f32.mrb[5].mxu0 }
 0x258   :  { %v454_v53 = vpop.f32.mrb[4].mxu1 }
 0x259   :  { %468 = vst [vmem:[#allocation11 + $0x8] sm:$0xff] %v454_v53  ;;  %v456_v54 = vpop.f32.mrb[5].mxu1 }
 0x25a   :  { %800 = shalt.err (!%p797_p8)
}
 0x25b   :  { %s801_s17 = scalar_lea.hbm %s949_s4, 256 }
 0x25c   :  { %p802_p9 = scmp.ne.s32.totalorder %s949_s4, %s801_s17  ;;  %p805_p10 = scmp.lt.u32.totalorder %s801_s17, %s949_s4 }
 0x25e   :  { %p807_p11 = pnand %p805_p10, %p802_p9 }
 0x260   :  { %810 = shalt.err (!%p807_p11)
}
 0x261   :  { %480 = dma.vmem_to_hbm [thread:$0]  %s475_s13, 256, %s949_s4, [#allocation5], %s821_s27, %s821_s27, %s822_s28  }
 0x262   :  { %817 = dma.done.wait [#allocation5], 256  }
 0x263   :  { %818 = vsyncadd [#allocation5], 4294967040 }
 0x264   :  { %484 = vsyncpa [#allocation4], 1 }
 0x265   :  { %485 = vsyncpa [#allocation7], 1 }
 0x266   :  { %486 = vsyncpa [#allocation10], 1 }
 0x267   :  { %487 = vsyncpa [#allocation5], 1 }

</bundles_post_ra>
